<compile_context>
chip_gen: v7x
topology: tpu7x:2x2x1
jax: 0.10.0
libtpu: 0.0.40
codegen_flags: <defaults>
</compile_context>

<pallas_src>
import jax
import jax.numpy as jnp
from jax.experimental import pallas as pl
from jax.experimental.pallas import tpu as pltpu


def _identity_kernel(x_ref, o_ref):
    # Pure lane-dense pass-through of the current VMEM tile.
    o_ref[...] = x_ref[...]


_LANE = 128
# ~2 MiB per block: (1 in + 1 out) x double-buffer x 2 MiB = 8 MiB of VMEM,
# safely under v5e's 16 MiB default scoped limit and v6e/v7x's 32 MiB.
# Measured copy roofline plateaus (~85% of HBM BW) by 1-2 MiB tiles, so
# nothing is lost versus larger blocks.
_TARGET_BLOCK_BYTES = 2 * 1024 * 1024


def _pallas_copy_slab(slab: jax.Array) -> jax.Array:
    """HBM-bandwidth-bound lane-dense 2-D copy through VMEM."""
    n_rows, n_cols = slab.shape
    itemsize = jnp.dtype(slab.dtype).itemsize
    # dtype-aware sublane multiple: 8 (f32), 16 (bf16/f16), 32 (int8/fp8).
    sublane = max(8, 32 // max(1, itemsize))

    rows_for_target = max(
        sublane, (_TARGET_BLOCK_BYTES // (n_cols * itemsize) // sublane) * sublane
    )
    num_steps = pl.cdiv(n_rows, rows_for_target)
    # v7x megacore: "parallel" shards the 1-D grid across 2 TensorCores, so
    # guarantee >= 2 (and an even number of) steps whenever the array is big
    # enough to split; otherwise one core idles.
    if num_steps == 1 and n_rows >= 2 * sublane:
        num_steps = 2
    elif num_steps > 1 and num_steps % 2 == 1:
        num_steps += 1
    tile_rows = pl.cdiv(n_rows, num_steps)
    tile_rows = max(sublane, pl.cdiv(tile_rows, sublane) * sublane)
    tile_rows = min(tile_rows, n_rows)  # full extent is always a legal block
    grid = (pl.cdiv(n_rows, tile_rows),)

    n_bytes = n_rows * n_cols * itemsize
    return pl.pallas_call(
        _identity_kernel,
        out_shape=jax.ShapeDtypeStruct((n_rows, n_cols), slab.dtype),
        grid=grid,
        in_specs=[pl.BlockSpec((tile_rows, n_cols), lambda i: (i, 0))],
        out_specs=pl.BlockSpec((tile_rows, n_cols), lambda i: (i, 0)),
        cost_estimate=pl.CostEstimate(
            flops=0, transcendentals=0, bytes_accessed=2 * n_bytes
        ),
        compiler_params=pltpu.CompilerParams(
            dimension_semantics=("parallel",),
        ),
    )(slab)


def straight_through(x: jax.Array, *, materialize: bool = False) -> jax.Array:
    """StraightThrough.forward: identity.

    Default (hot) path returns the input unchanged -- no kernel launch, no
    HBM traffic; nothing beats "no copy at all" for an identity op.  With
    ``materialize=True`` a fresh output buffer is produced via a Pallas copy
    kernel (no input/output aliasing, so XLA never inserts a defensive copy
    of a non-donated argument).
    """
    if not materialize:
        return x

    orig_shape = x.shape
    n = x.size
    if n == 0:
        return x

    flat = x.reshape(-1)
    tail = n % _LANE
    n_main = n - tail

    out_parts = []
    if n_main > 0:
        # Widest lane-dense column width (multiple of 128) dividing n_main,
        # so stores are unmasked full-width vst.
        n_cols = _LANE
        for cand in (4096, 2048, 1024, 512, 256):
            if n_main % cand == 0:
                n_cols = cand
                break
        slab = flat[:n_main].reshape(n_main // n_cols, n_cols)
        out_parts.append(_pallas_copy_slab(slab).reshape(-1))
    if tail:
        # <128-element ragged tail: copied outside the kernel (tiny concat)
        # instead of jnp.pad-ing the whole array for a sub-vreg remainder.
        out_parts.append(flat[n_main:])

    out_flat = out_parts[0] if len(out_parts) == 1 else jnp.concatenate(out_parts)
    return out_flat.reshape(orig_shape)


if __name__ == "__main__":
    key = jax.random.PRNGKey(0)
    # Small NCHW input consistent with typical conv-style usage.
    x = jax.random.normal(key, (2, 4, 16, 16), dtype=jnp.float32)

    # Hot path: pure identity, no kernel launched.
    y_fast = straight_through(x)

    # Materialized path: exercises the Pallas copy kernel once.
    y_kernel = straight_through(x, materialize=True)
    jax.block_until_ready(y_kernel)

    assert y_fast.shape == x.shape and y_fast.dtype == x.dtype
    assert y_kernel.shape == x.shape and y_kernel.dtype == x.dtype
    assert bool(jnp.all(y_fast == x))
    assert bool(jnp.all(y_kernel == x))

    print("KERNEL_OK")
</pallas_src>

<mosaic_0001>
module attributes {stable_mosaic.version = 11 : i64} {
  func.func @_identity_kernel(%arg0: i32, %arg1: memref<1x2048xf32, #tpu.memory_space<vmem>>, %arg2: memref<1x2048xf32, #tpu.memory_space<vmem>>) attributes {dimension_semantics = [#tpu.dimension_semantics<parallel>], iteration_bounds = array<i64: 1>, scalar_prefetch = 0 : i64, scratch_operands = 0 : i64, tpu.core_type = #tpu.core_type<tc>, window_params = [{transform_indices = @transform_0, window_bounds = array<i64: 1, 2048>}, {transform_indices = @transform_1, window_bounds = array<i64: 1, 2048>}]} {
    %c0 = arith.constant 0 : index
    %c0_0 = arith.constant 0 : index
    %0 = vector.load %arg1[%c0, %c0_0] : memref<1x2048xf32, #tpu.memory_space<vmem>>, vector<1x2048xf32>
    %c0_1 = arith.constant 0 : index
    %c0_2 = arith.constant 0 : index
    %1 = vector.load %arg2[%c0_1, %c0_2] : memref<1x2048xf32, #tpu.memory_space<vmem>>, vector<1x2048xf32>
    tpu.vector_store %arg2[%c0_1, %c0_2], %0 {strides = array<i32>} : memref<1x2048xf32, #tpu.memory_space<vmem>>, vector<1x2048xf32>,
    return
  }
  func.func @transform_0(%arg0: i32) -> (i32, i32) {
    %c0_i32 = arith.constant 0 : i32
    %c0_i32_0 = arith.constant 0 : i32
    return %arg0, %c0_i32 : i32, i32
  }
  func.func @transform_1(%arg0: i32) -> (i32, i32) {
    %c0_i32 = arith.constant 0 : i32
    %c0_i32_0 = arith.constant 0 : i32
    return %arg0, %c0_i32 : i32, i32
  }
}

</mosaic_0001>

<bundles_post_ra>
// kernel: tpu_custom_call.1
= control target key start
LH: loop header
LB: loop body
LE: loop exit
PB: predicated region body
PF: predicated region fallthrough
CT: control target
= control target key end

     0   :  { %6 = vsyncpa [#allocation3], 0  ;;  %s126_s0 = inlined_call_operand.hbm [shape: f32[1,2048], index: 0, kind: input, shape index: {}]   ;;  %s127_s1 = inlined_call_operand.hbm [shape: f32[1,2048], index: 1, kind: output, shape index: {}]  }
   0x1   :  { %7 = vsyncpa [#allocation4], 0  ;;  %s90_s6 = smov [#allocation2]   ;;  %s42_s10 = scalar_lea.hbm %s126_s0, 256 }
   0x2   :  { %s14_s7 = sshll.u32 %s90_s6, 4  ;;  %p43_p0 = scmp.ne.s32.totalorder %s126_s0, %s42_s10  ;;  %s15_s7 = int_to_ptr.vmem [resolvable:$true] %s14_s7 }
   0x3   :  { %p46_p1 = scmp.lt.u32.totalorder %s42_s10, %s126_s0 }
   0x5   :  { %p48_p2 = pnand %p46_p1, %p43_p0 }
   0x7   :  { %51 = shalt.err (!%p48_p2)
}
   0x8   :  { %s52_s15 = scalar_lea.vmem %s15_s7, 256  ;;  %p57_p4 = scmp.lt.s32.totalorder %s15_s7, %s15_s7 }
   0x9   :  { %p53_p3 = scmp.ne.s32.totalorder %s15_s7, %s52_s15  ;;  %p58_p5 = scmp.lt.s32.totalorder %s52_s15, %s52_s15 }
   0xb   :  { %p59_p6 = por %p58_p5, %p57_p4 }
   0xd   :  { %p60_p7 = pnand %p59_p6, %p53_p3 }
   0xf   :  { %63 = shalt.err (!%p60_p7)
}
  0x10   :  { %17 = dma.hbm_to_vmem [thread:$0]  %s126_s0, 256, %s15_s7, [#allocation3]  }
  0x11   :  { %86 = dma.done.wait [#allocation3], 256  }
  0x12   :  { %87 = vsyncadd [#allocation3], 4294967040  ;;  %s91_s18 = smov [#allocation5]   ;;  %v21_v0 = vld [vmem:[#allocation2] sm:$0xff]  ;;  %v22_v1 = vld [vmem:[#allocation2 + $0x8] sm:$0xff] }
  0x13   :  { %s31_s19 = sshll.u32 %s91_s18, 4  ;;  %23 = vst [vmem:[#allocation5] sm:$0xff] %v21_v0  ;;  %24 = vst [vmem:[#allocation5 + $0x8] sm:$0xff] %v22_v1  ;;  %s32_s19 = int_to_ptr.vmem [resolvable:$true] %s31_s19 }
  0x14   :  { %s64_s20 = scalar_lea.vmem %s32_s19, 256  ;;  %p69_p9 = scmp.lt.s32.totalorder %s32_s19, %s32_s19 }
  0x15   :  { %p65_p8 = scmp.ne.s32.totalorder %s32_s19, %s64_s20  ;;  %p70_p10 = scmp.lt.s32.totalorder %s64_s20, %s64_s20 }
  0x17   :  { %p71_p11 = por %p70_p10, %p69_p9 }
  0x19   :  { %p72_p12 = pnand %p71_p11, %p65_p8 }
  0x1b   :  { %75 = shalt.err (!%p72_p12)
}
  0x1c   :  { %s76_s0 = scalar_lea.hbm %s127_s1, 256 }
  0x1d   :  { %p77_p13 = scmp.ne.s32.totalorder %s127_s1, %s76_s0  ;;  %p80_p0 = scmp.lt.u32.totalorder %s76_s0, %s127_s1 }
  0x1f   :  { %p82_p1 = pnand %p80_p0, %p77_p13 }
  0x21   :  { %85 = shalt.err (!%p82_p1)
}
  0x22   :  { %34 = dma.vmem_to_hbm [thread:$0]  %s32_s19, 256, %s127_s1, [#allocation4]  }
  0x23   :  { %88 = dma.done.wait [#allocation4], 256  }
  0x24   :  { %89 = vsyncadd [#allocation4], 4294967040 }
  0x25   :  { %38 = vsyncpa [#allocation3], 1 }
  0x26   :  { %39 = vsyncpa [#allocation4], 1 }

</bundles_post_ra>
